<compile_context>
chip_gen: v5e
topology: v5e:2x2
jax: 0.10.0
libtpu: 0.0.40
codegen_flags: <defaults>
</compile_context>

<pallas_src>
import jax
import jax.numpy as jnp
from jax.experimental import pallas as pl
from jax.experimental.pallas import tpu as pltpu


def _round_up(v, m):
    return ((v + m - 1) // m) * m


def _vmem_spec():
    return pl.BlockSpec(memory_space=pltpu.MemorySpace.VMEM)


# ---------------- fused Pallas kernel ----------------

def make_gin_kernel(num_layers):
    """Fused GIN forward for a fixed (static) number of conv layers.

    Ref order: a (N,N) bf16, p (G,N) bf16, x (N,D) bf16,
               w_stack (2L+2, D, D) bf16, b_stack (2L+2, D) f32, out (G,D) f32.
    Weight slab k: [w1_0, w2_0, w1_1, w2_1, ..., mlp_w1, mlp_w2]; biases likewise.
    """

    def kernel(a_ref, p_ref, x_ref, w_ref, b_ref, o_ref):
        a = a_ref[...]          # (N, N) bf16, self-loop already folded in
        h = x_ref[...]          # (N, D) bf16, IN_C zero-padded to D

        for layer in range(num_layers):
            w1 = w_ref[2 * layer]                           # (D, D) bf16
            b1 = b_ref[pl.ds(2 * layer, 1), :]              # (1, D) f32
            w2 = w_ref[2 * layer + 1]
            b2 = b_ref[pl.ds(2 * layer + 1, 1), :]

            # GINConv aggregation: (A + (1+eps) I) @ h  -- one MXU matmul.
            agg = jnp.dot(a, h, preferred_element_type=jnp.float32)
            # nn = Linear -> ReLU -> Linear
            z = jnp.dot(agg.astype(jnp.bfloat16), w1,
                        preferred_element_type=jnp.float32) + b1
            z = jnp.maximum(z, 0.0)
            z = jnp.dot(z.astype(jnp.bfloat16), w2,
                        preferred_element_type=jnp.float32) + b2
            # .relu() applied after each conv in GIN.forward
            h = jnp.maximum(z, 0.0).astype(jnp.bfloat16)

        # global_add_pool as a matmul with the (zero-row-padded) pooling matrix.
        pooled = jnp.dot(p_ref[...], h, preferred_element_type=jnp.float32)

        # final mlp: Linear -> ReLU -> Linear (no trailing relu); out cols padded to D.
        mw1 = w_ref[2 * num_layers]
        mb1 = b_ref[pl.ds(2 * num_layers, 1), :]
        mw2 = w_ref[2 * num_layers + 1]
        mb2 = b_ref[pl.ds(2 * num_layers + 1, 1), :]
        z = jnp.dot(pooled.astype(jnp.bfloat16), mw1,
                    preferred_element_type=jnp.float32) + mb1
        z = jnp.maximum(z, 0.0)
        o_ref[...] = jnp.dot(z.astype(jnp.bfloat16), mw2,
                             preferred_element_type=jnp.float32) + mb2

    return kernel


# ---------------- wrapper ----------------

def gin_forward(params, x, edge_index, batch, num_graphs):
    n, in_c = x.shape
    convs = params["convs"]
    mw1, mb1, mw2, mb2 = params["mlp"]
    num_layers = len(convs)
    hid = convs[0][2].shape[0]          # fan_in of each conv's second Linear
    out_c = mw2.shape[1]
    eps = 0.0                           # train_eps=False

    # Lane-dense padded dims.
    d = _round_up(max(hid, in_c, out_c), 128)     # common feature width
    ng_pad = _round_up(max(num_graphs, 8), 8)     # output sublane-dense rows

    src, dst = edge_index[0], edge_index[1]
    # dense adjacency A[i, j] = #edges j -> i, with self-loop (1+eps)*I folded in
    a = jnp.zeros((n, n), jnp.float32).at[dst, src].add(1.0)
    a = a + (1.0 + eps) * jnp.eye(n, dtype=jnp.float32)
    # pooling matrix padded with zero rows: P[g, i] = 1 iff batch[i] == g
    p = (batch[None, :] == jnp.arange(ng_pad)[:, None]).astype(jnp.float32)

    # zero-pad feature columns of x to d (free numerically; lane-dense layer 0)
    x_pad = jnp.zeros((n, d), jnp.float32).at[:, :in_c].set(x)

    def pad_w(w):
        return jnp.zeros((d, d), jnp.float32).at[:w.shape[0], :w.shape[1]].set(w)

    def pad_b(b):
        b = b.reshape(-1)
        return jnp.zeros((d,), jnp.float32).at[:b.shape[0]].set(b)

    w_list, b_list = [], []
    for (w1, b1, w2, b2) in convs:
        w_list += [pad_w(w1), pad_w(w2)]
        b_list += [pad_b(b1), pad_b(b2)]
    w_list += [pad_w(mw1), pad_w(mw2)]
    b_list += [pad_b(mb1), pad_b(mb2)]

    # Stacked weight / bias slabs: 5 kernel inputs total instead of 19.
    w_stack = jnp.stack(w_list).astype(jnp.bfloat16)   # (2L+2, d, d) bf16
    b_stack = jnp.stack(b_list)                        # (2L+2, d)    f32

    # bf16 MXU inputs (exact for A / P / small weights); f32 accumulation in-kernel.
    a_bf = a.astype(jnp.bfloat16)
    p_bf = p.astype(jnp.bfloat16)
    x_bf = x_pad.astype(jnp.bfloat16)

    inputs = (a_bf, p_bf, x_bf, w_stack, b_stack)
    out_bytes = ng_pad * d * 4
    bytes_accessed = sum(int(t.size) * t.dtype.itemsize for t in inputs) + out_bytes
    flops = (num_layers * 2 * n * n * d                 # per-layer aggregation
             + num_layers * 4 * n * d * d               # per-layer 2x Linear
             + 2 * ng_pad * n * d                       # global_add_pool
             + 4 * ng_pad * d * d)                      # final MLP
    # Sized from actual buffers with generous headroom; well under every
    # generation's physical VMEM (v7x: 64 MiB).
    vmem_limit = int(min(max(8 * bytes_accessed, 16 << 20), 64 << 20))

    out_pad = pl.pallas_call(
        make_gin_kernel(num_layers),
        out_shape=jax.ShapeDtypeStruct((ng_pad, d), jnp.float32),
        in_specs=[_vmem_spec()] * len(inputs),
        out_specs=_vmem_spec(),
        compiler_params=pltpu.CompilerParams(vmem_limit_bytes=vmem_limit),
        cost_estimate=pl.CostEstimate(flops=int(flops), transcendentals=0,
                                      bytes_accessed=int(bytes_accessed)),
    )(*inputs)

    return out_pad[:num_graphs, :out_c]


# ---------------- deterministic parameter init (synthetic) ----------------

def init_linear(key, fan_in, fan_out):
    # mirrors torch.nn.Linear's uniform(-1/sqrt(fan_in), 1/sqrt(fan_in)) init
    kw, kb = jax.random.split(key)
    bound = 1.0 / float(fan_in) ** 0.5
    w = jax.random.uniform(kw, (fan_in, fan_out), jnp.float32, -bound, bound)
    b = jax.random.uniform(kb, (1, fan_out), jnp.float32, -bound, bound)
    return w, b


# ---------------- pure-JAX reference (mirrors the kernel's bf16 casts) ----------------

def ref_forward(params, x, edge_index, batch, num_graphs):
    f32 = jnp.float32
    bf = lambda t: t.astype(jnp.bfloat16).astype(f32)  # bf16 round-trip, math in f32
    n = x.shape[0]
    a = jnp.zeros((n, n), f32).at[edge_index[1], edge_index[0]].add(1.0)
    a = bf(a + jnp.eye(n, dtype=f32))
    p = bf((batch[None, :] == jnp.arange(num_graphs)[:, None]).astype(f32))
    h = bf(x)
    for (w1, b1, w2, b2) in params["convs"]:
        agg = a @ h
        z = jnp.maximum(bf(agg) @ bf(w1) + b1, 0.0)
        z = jnp.maximum(bf(z) @ bf(w2) + b2, 0.0)
        h = bf(z)
    pooled = p @ h
    mw1, mb1, mw2, mb2 = params["mlp"]
    z = jnp.maximum(bf(pooled) @ bf(mw1) + mb1, 0.0)
    return bf(z) @ bf(mw2) + mb2


if __name__ == "__main__":
    # Lane-friendly toy shapes: HID = 128 keeps the hidden feature dim lane-dense.
    IN_C, HID, OUT_C, NUM_LAYERS = 16, 128, 8, 3
    N_NODES, N_EDGES, N_GRAPHS = 64, 256, 4

    key = jax.random.PRNGKey(0)
    key, k_x, k_e = jax.random.split(key, 3)
    x = jax.random.normal(k_x, (N_NODES, IN_C), jnp.float32)
    edge_index = jax.random.randint(k_e, (2, N_EDGES), 0, N_NODES, dtype=jnp.int32)
    batch = jnp.repeat(jnp.arange(N_GRAPHS, dtype=jnp.int32), N_NODES // N_GRAPHS)

    params = {"convs": [], "mlp": None}
    c_in = IN_C
    for _ in range(NUM_LAYERS):
        key, k1, k2 = jax.random.split(key, 3)
        w1, b1 = init_linear(k1, c_in, HID)
        w2, b2 = init_linear(k2, HID, HID)
        params["convs"].append((w1, b1, w2, b2))
        c_in = HID
    key, k1, k2 = jax.random.split(key, 3)
    fw1, fb1 = init_linear(k1, HID, HID)
    fw2, fb2 = init_linear(k2, HID, OUT_C)
    params["mlp"] = (fw1, fb1, fw2, fb2)

    out = gin_forward(params, x, edge_index, batch, N_GRAPHS)
    out = jax.block_until_ready(out)

    ref = ref_forward(params, x, edge_index, batch, N_GRAPHS)
    assert out.shape == (N_GRAPHS, OUT_C)
    assert jnp.allclose(out, ref, atol=2e-3, rtol=2e-3), "mismatch vs pure-JAX reference"

    print("KERNEL_OK")
</pallas_src>

<mosaic_0001>
module attributes {stable_mosaic.version = 11 : i64} {
  func.func @kernel(%arg0: memref<64x64xbf16, #tpu.memory_space<vmem>>, %arg1: memref<8x64xbf16, #tpu.memory_space<vmem>>, %arg2: memref<64x128xbf16, #tpu.memory_space<vmem>>, %arg3: memref<8x128x128xbf16, #tpu.memory_space<vmem>>, %arg4: memref<8x128xf32, #tpu.memory_space<vmem>>, %arg5: memref<8x128xf32, #tpu.memory_space<vmem>>) attributes {dimension_semantics = [], scalar_prefetch = 0 : i64, scratch_operands = 0 : i64, tpu.core_type = #tpu.core_type<tc>} {
    %c0 = arith.constant 0 : index
    %c0_0 = arith.constant 0 : index
    %0 = vector.load %arg0[%c0, %c0_0] : memref<64x64xbf16, #tpu.memory_space<vmem>>, vector<64x64xbf16>
    %c0_1 = arith.constant 0 : index
    %c0_2 = arith.constant 0 : index
    %1 = vector.load %arg2[%c0_1, %c0_2] : memref<64x128xbf16, #tpu.memory_space<vmem>>, vector<64x128xbf16>
    %c0_3 = arith.constant 0 : index
    %c0_4 = arith.constant 0 : index
    %c0_5 = arith.constant 0 : index
    %2 = vector.load %arg3[%c0_3, %c0_4, %c0_5] : memref<8x128x128xbf16, #tpu.memory_space<vmem>>, vector<1x128x128xbf16>
    %3 = vector.shape_cast %2 : vector<1x128x128xbf16> to vector<128x128xbf16>
    %c0_6 = arith.constant 0 : index
    %c0_7 = arith.constant 0 : index
    %4 = vector.load %arg4[%c0_6, %c0_7] : memref<8x128xf32, #tpu.memory_space<vmem>>, vector<1x128xf32>
    %c1 = arith.constant 1 : index
    %c0_8 = arith.constant 0 : index
    %c0_9 = arith.constant 0 : index
    %5 = vector.load %arg3[%c1, %c0_8, %c0_9] : memref<8x128x128xbf16, #tpu.memory_space<vmem>>, vector<1x128x128xbf16>
    %6 = vector.shape_cast %5 : vector<1x128x128xbf16> to vector<128x128xbf16>
    %c1_10 = arith.constant 1 : index
    %c0_11 = arith.constant 0 : index
    %7 = vector.load %arg4[%c1_10, %c0_11] : memref<8x128xf32, #tpu.memory_space<vmem>>, vector<1x128xf32>
    %cst = arith.constant dense<0.000000e+00> : vector<64x128xf32>
    %8 = tpu.matmul %0, %1, %cst {dimension_numbers = #tpu.dot_dimension_numbers<[1], [0], [0], [1], [0, 0, 1, 1], [], []>} : vector<64x64xbf16>, vector<64x128xbf16>, vector<64x128xf32> -> vector<64x128xf32>
    %9 = arith.truncf %8 : vector<64x128xf32> to vector<64x128xbf16>
    %cst_12 = arith.constant dense<0.000000e+00> : vector<64x128xf32>
    %10 = tpu.matmul %9, %3, %cst_12 {dimension_numbers = #tpu.dot_dimension_numbers<[1], [0], [0], [1], [0, 0, 1, 1], [], []>} : vector<64x128xbf16>, vector<128x128xbf16>, vector<64x128xf32> -> vector<64x128xf32>
    %11 = vector.broadcast %4 : vector<1x128xf32> to vector<64x128xf32>
    %12 = arith.addf %10, %11 : vector<64x128xf32>
    %cst_13 = arith.constant 0.000000e+00 : f32
    %13 = vector.broadcast %cst_13 : f32 to vector<64x128xf32>
    %14 = arith.maximumf %12, %13 : vector<64x128xf32>
    %15 = arith.truncf %14 : vector<64x128xf32> to vector<64x128xbf16>
    %cst_14 = arith.constant dense<0.000000e+00> : vector<64x128xf32>
    %16 = tpu.matmul %15, %6, %cst_14 {dimension_numbers = #tpu.dot_dimension_numbers<[1], [0], [0], [1], [0, 0, 1, 1], [], []>} : vector<64x128xbf16>, vector<128x128xbf16>, vector<64x128xf32> -> vector<64x128xf32>
    %17 = vector.broadcast %7 : vector<1x128xf32> to vector<64x128xf32>
    %18 = arith.addf %16, %17 : vector<64x128xf32>
    %cst_15 = arith.constant 0.000000e+00 : f32
    %19 = vector.broadcast %cst_15 : f32 to vector<64x128xf32>
    %20 = arith.maximumf %18, %19 : vector<64x128xf32>
    %21 = arith.truncf %20 : vector<64x128xf32> to vector<64x128xbf16>
    %c2 = arith.constant 2 : index
    %c0_16 = arith.constant 0 : index
    %c0_17 = arith.constant 0 : index
    %22 = vector.load %arg3[%c2, %c0_16, %c0_17] : memref<8x128x128xbf16, #tpu.memory_space<vmem>>, vector<1x128x128xbf16>
    %23 = vector.shape_cast %22 : vector<1x128x128xbf16> to vector<128x128xbf16>
    %c2_18 = arith.constant 2 : index
    %c0_19 = arith.constant 0 : index
    %24 = vector.load %arg4[%c2_18, %c0_19] : memref<8x128xf32, #tpu.memory_space<vmem>>, vector<1x128xf32>
    %c3 = arith.constant 3 : index
    %c0_20 = arith.constant 0 : index
    %c0_21 = arith.constant 0 : index
    %25 = vector.load %arg3[%c3, %c0_20, %c0_21] : memref<8x128x128xbf16, #tpu.memory_space<vmem>>, vector<1x128x128xbf16>
    %26 = vector.shape_cast %25 : vector<1x128x128xbf16> to vector<128x128xbf16>
    %c3_22 = arith.constant 3 : index
    %c0_23 = arith.constant 0 : index
    %27 = vector.load %arg4[%c3_22, %c0_23] : memref<8x128xf32, #tpu.memory_space<vmem>>, vector<1x128xf32>
    %cst_24 = arith.constant dense<0.000000e+00> : vector<64x128xf32>
    %28 = tpu.matmul %0, %21, %cst_24 {dimension_numbers = #tpu.dot_dimension_numbers<[1], [0], [0], [1], [0, 0, 1, 1], [], []>} : vector<64x64xbf16>, vector<64x128xbf16>, vector<64x128xf32> -> vector<64x128xf32>
    %29 = arith.truncf %28 : vector<64x128xf32> to vector<64x128xbf16>
    %cst_25 = arith.constant dense<0.000000e+00> : vector<64x128xf32>
    %30 = tpu.matmul %29, %23, %cst_25 {dimension_numbers = #tpu.dot_dimension_numbers<[1], [0], [0], [1], [0, 0, 1, 1], [], []>} : vector<64x128xbf16>, vector<128x128xbf16>, vector<64x128xf32> -> vector<64x128xf32>
    %31 = vector.broadcast %24 : vector<1x128xf32> to vector<64x128xf32>
    %32 = arith.addf %30, %31 : vector<64x128xf32>
    %cst_26 = arith.constant 0.000000e+00 : f32
    %33 = vector.broadcast %cst_26 : f32 to vector<64x128xf32>
    %34 = arith.maximumf %32, %33 : vector<64x128xf32>
    %35 = arith.truncf %34 : vector<64x128xf32> to vector<64x128xbf16>
    %cst_27 = arith.constant dense<0.000000e+00> : vector<64x128xf32>
    %36 = tpu.matmul %35, %26, %cst_27 {dimension_numbers = #tpu.dot_dimension_numbers<[1], [0], [0], [1], [0, 0, 1, 1], [], []>} : vector<64x128xbf16>, vector<128x128xbf16>, vector<64x128xf32> -> vector<64x128xf32>
    %37 = vector.broadcast %27 : vector<1x128xf32> to vector<64x128xf32>
    %38 = arith.addf %36, %37 : vector<64x128xf32>
    %cst_28 = arith.constant 0.000000e+00 : f32
    %39 = vector.broadcast %cst_28 : f32 to vector<64x128xf32>
    %40 = arith.maximumf %38, %39 : vector<64x128xf32>
    %41 = arith.truncf %40 : vector<64x128xf32> to vector<64x128xbf16>
    %c4 = arith.constant 4 : index
    %c0_29 = arith.constant 0 : index
    %c0_30 = arith.constant 0 : index
    %42 = vector.load %arg3[%c4, %c0_29, %c0_30] : memref<8x128x128xbf16, #tpu.memory_space<vmem>>, vector<1x128x128xbf16>
    %43 = vector.shape_cast %42 : vector<1x128x128xbf16> to vector<128x128xbf16>
    %c4_31 = arith.constant 4 : index
    %c0_32 = arith.constant 0 : index
    %44 = vector.load %arg4[%c4_31, %c0_32] : memref<8x128xf32, #tpu.memory_space<vmem>>, vector<1x128xf32>
    %c5 = arith.constant 5 : index
    %c0_33 = arith.constant 0 : index
    %c0_34 = arith.constant 0 : index
    %45 = vector.load %arg3[%c5, %c0_33, %c0_34] : memref<8x128x128xbf16, #tpu.memory_space<vmem>>, vector<1x128x128xbf16>
    %46 = vector.shape_cast %45 : vector<1x128x128xbf16> to vector<128x128xbf16>
    %c5_35 = arith.constant 5 : index
    %c0_36 = arith.constant 0 : index
    %47 = vector.load %arg4[%c5_35, %c0_36] : memref<8x128xf32, #tpu.memory_space<vmem>>, vector<1x128xf32>
    %cst_37 = arith.constant dense<0.000000e+00> : vector<64x128xf32>
    %48 = tpu.matmul %0, %41, %cst_37 {dimension_numbers = #tpu.dot_dimension_numbers<[1], [0], [0], [1], [0, 0, 1, 1], [], []>} : vector<64x64xbf16>, vector<64x128xbf16>, vector<64x128xf32> -> vector<64x128xf32>
    %49 = arith.truncf %48 : vector<64x128xf32> to vector<64x128xbf16>
    %cst_38 = arith.constant dense<0.000000e+00> : vector<64x128xf32>
    %50 = tpu.matmul %49, %43, %cst_38 {dimension_numbers = #tpu.dot_dimension_numbers<[1], [0], [0], [1], [0, 0, 1, 1], [], []>} : vector<64x128xbf16>, vector<128x128xbf16>, vector<64x128xf32> -> vector<64x128xf32>
    %51 = vector.broadcast %44 : vector<1x128xf32> to vector<64x128xf32>
    %52 = arith.addf %50, %51 : vector<64x128xf32>
    %cst_39 = arith.constant 0.000000e+00 : f32
    %53 = vector.broadcast %cst_39 : f32 to vector<64x128xf32>
    %54 = arith.maximumf %52, %53 : vector<64x128xf32>
    %55 = arith.truncf %54 : vector<64x128xf32> to vector<64x128xbf16>
    %cst_40 = arith.constant dense<0.000000e+00> : vector<64x128xf32>
    %56 = tpu.matmul %55, %46, %cst_40 {dimension_numbers = #tpu.dot_dimension_numbers<[1], [0], [0], [1], [0, 0, 1, 1], [], []>} : vector<64x128xbf16>, vector<128x128xbf16>, vector<64x128xf32> -> vector<64x128xf32>
    %57 = vector.broadcast %47 : vector<1x128xf32> to vector<64x128xf32>
    %58 = arith.addf %56, %57 : vector<64x128xf32>
    %cst_41 = arith.constant 0.000000e+00 : f32
    %59 = vector.broadcast %cst_41 : f32 to vector<64x128xf32>
    %60 = arith.maximumf %58, %59 : vector<64x128xf32>
    %61 = arith.truncf %60 : vector<64x128xf32> to vector<64x128xbf16>
    %c0_42 = arith.constant 0 : index
    %c0_43 = arith.constant 0 : index
    %62 = vector.load %arg1[%c0_42, %c0_43] : memref<8x64xbf16, #tpu.memory_space<vmem>>, vector<8x64xbf16>
    %cst_44 = arith.constant dense<0.000000e+00> : vector<8x128xf32>
    %63 = tpu.matmul %62, %61, %cst_44 {dimension_numbers = #tpu.dot_dimension_numbers<[1], [0], [0], [1], [0, 0, 1, 1], [], []>} : vector<8x64xbf16>, vector<64x128xbf16>, vector<8x128xf32> -> vector<8x128xf32>
    %c6 = arith.constant 6 : index
    %c0_45 = arith.constant 0 : index
    %c0_46 = arith.constant 0 : index
    %64 = vector.load %arg3[%c6, %c0_45, %c0_46] : memref<8x128x128xbf16, #tpu.memory_space<vmem>>, vector<1x128x128xbf16>
    %65 = vector.shape_cast %64 : vector<1x128x128xbf16> to vector<128x128xbf16>
    %c6_47 = arith.constant 6 : index
    %c0_48 = arith.constant 0 : index
    %66 = vector.load %arg4[%c6_47, %c0_48] : memref<8x128xf32, #tpu.memory_space<vmem>>, vector<1x128xf32>
    %c7 = arith.constant 7 : index
    %c0_49 = arith.constant 0 : index
    %c0_50 = arith.constant 0 : index
    %67 = vector.load %arg3[%c7, %c0_49, %c0_50] : memref<8x128x128xbf16, #tpu.memory_space<vmem>>, vector<1x128x128xbf16>
    %68 = vector.shape_cast %67 : vector<1x128x128xbf16> to vector<128x128xbf16>
    %c7_51 = arith.constant 7 : index
    %c0_52 = arith.constant 0 : index
    %69 = vector.load %arg4[%c7_51, %c0_52] : memref<8x128xf32, #tpu.memory_space<vmem>>, vector<1x128xf32>
    %70 = arith.truncf %63 : vector<8x128xf32> to vector<8x128xbf16>
    %cst_53 = arith.constant dense<0.000000e+00> : vector<8x128xf32>
    %71 = tpu.matmul %70, %65, %cst_53 {dimension_numbers = #tpu.dot_dimension_numbers<[1], [0], [0], [1], [0, 0, 1, 1], [], []>} : vector<8x128xbf16>, vector<128x128xbf16>, vector<8x128xf32> -> vector<8x128xf32>
    %72 = vector.broadcast %66 : vector<1x128xf32> to vector<8x128xf32>
    %73 = arith.addf %71, %72 : vector<8x128xf32>
    %cst_54 = arith.constant 0.000000e+00 : f32
    %74 = vector.broadcast %cst_54 : f32 to vector<8x128xf32>
    %75 = arith.maximumf %73, %74 : vector<8x128xf32>
    %76 = arith.truncf %75 : vector<8x128xf32> to vector<8x128xbf16>
    %cst_55 = arith.constant dense<0.000000e+00> : vector<8x128xf32>
    %77 = tpu.matmul %76, %68, %cst_55 {dimension_numbers = #tpu.dot_dimension_numbers<[1], [0], [0], [1], [0, 0, 1, 1], [], []>} : vector<8x128xbf16>, vector<128x128xbf16>, vector<8x128xf32> -> vector<8x128xf32>
    %78 = vector.broadcast %69 : vector<1x128xf32> to vector<8x128xf32>
    %79 = arith.addf %77, %78 : vector<8x128xf32>
    %c0_56 = arith.constant 0 : index
    %c0_57 = arith.constant 0 : index
    %80 = vector.load %arg5[%c0_56, %c0_57] : memref<8x128xf32, #tpu.memory_space<vmem>>, vector<8x128xf32>
    tpu.vector_store %arg5[%c0_56, %c0_57], %79 {strides = array<i32>} : memref<8x128xf32, #tpu.memory_space<vmem>>, vector<8x128xf32>,
    return
  }
}

</mosaic_0001>

<bundles_post_ra>
// kernel: tpu_custom_call.1
= control target key start
LH: loop header
LB: loop body
LE: loop exit
PB: predicated region body
PF: predicated region fallthrough
CT: control target
= control target key end

     0   :  { %10 = vsyncpa [#allocation3], 0  ;;  %s1749_s0 = inlined_call_operand.hbm [shape: bf16[64,64], index: 0, kind: input, shape index: {}]   ;;  %s1750_s1 = inlined_call_operand.hbm [shape: bf16[8,64], index: 1, kind: input, shape index: {}]   ;;  %s1751_s2 = inlined_call_operand.hbm [shape: bf16[64,128], index: 2, kind: input, shape index: {}]   ;;  %s1752_s3 = inlined_call_operand.hbm [shape: bf16[8,128,128], index: 3, kind: input, shape index: {}]   ;;  %s1753_s4 = inlined_call_operand.hbm [shape: f32[8,128], index: 4, kind: input, shape index: {}]   ;;  %s1754_s5 = inlined_call_operand.hbm [shape: f32[8,128], index: 5, kind: output, shape index: {}]  }
   0x1   :  { %11 = vsyncpa [#allocation6], 0 }
   0x2   :  { %12 = vsyncpa [#allocation9], 0  ;;  %s32_s20 = sshll.u32 %s1750_s1, 4  ;;  %s33_s20 = int_to_ptr.hbm [resolvable:$true] %s32_s20 }
   0x3   :  { %13 = vsyncpa [#allocation4], 0  ;;  %s1660_s21 = smov [#allocation5]   ;;  %s55_s25 = sshll.u32 %s1752_s3, 4  ;;  %s56_s25 = int_to_ptr.hbm [resolvable:$true] %s55_s25 }
   0x4   :  { %s34_s22 = sshll.u32 %s1660_s21, 4  ;;  %s1661_s26 = smov [#allocation8]   ;;  %s35_s22 = int_to_ptr.vmem [resolvable:$true] %s34_s22 }
   0x5   :  { %37 = dma.hbm_to_vmem [thread:$0]  %s33_s20, 64, %s35_s22, [#allocation6]  }
   0x6   :  { %s57_s27 = sshll.u32 %s1661_s26, 4  ;;  %s18_s30 = sshll.u32 %s1749_s0, 4  ;;  %s58_s27 = int_to_ptr.vmem [resolvable:$true] %s57_s27  ;;  %s19_s30 = int_to_ptr.hbm [resolvable:$true] %s18_s30 }
   0x7   :  { %s1662_s1 = smov 64   ;;  %s1663_s6 = smov 4  }
   0x8   :  { %63 = dma.hbm_to_vmem [thread:$0]  %s56_s25, 8192, %s58_s27, [#allocation9], %s1662_s1, %s1662_s1, %s1663_s6  }
   0x9   :  { %s42_s9 = sshll.u32 %s1751_s2, 4  ;;  %s1664_s10 = smov [#allocation2]   ;;  %s43_s9 = int_to_ptr.hbm [resolvable:$true] %s42_s9 }
   0xa   :  { %s20_s11 = sshll.u32 %s1664_s10, 4  ;;  %s1665_s3 = smov [#allocation7]   ;;  %s21_s11 = int_to_ptr.vmem [resolvable:$true] %s20_s11 }
   0xb   :  { %26 = dma.hbm_to_vmem [thread:$0]  %s19_s30, 512, %s21_s11, [#allocation3], %s1662_s1, %s1662_s1, %s1663_s6  }
   0xc   :  { %s44_s12 = sshll.u32 %s1665_s3, 4  ;;  %s69_s0 = sshll.u32 %s1753_s4, 4  ;;  %s45_s12 = int_to_ptr.vmem [resolvable:$true] %s44_s12  ;;  %s70_s0 = int_to_ptr.hbm [resolvable:$true] %s69_s0 }
   0xd   :  { %50 = dma.hbm_to_vmem [thread:$0]  %s43_s9, 512, %s45_s12, [#allocation6], %s1662_s1, %s1662_s1, %s1663_s6  }
   0xe   :  { %s1666_s15 = smov [#allocation10]  }
   0xf   :  { %s71_s16 = sshll.u32 %s1666_s15, 4  ;;  %s72_s16 = int_to_ptr.vmem [resolvable:$true] %s71_s16 }
  0x10   :  { %74 = dma.hbm_to_vmem [thread:$0]  %s70_s0, 128, %s72_s16, [#allocation9]  }
  0x11   :  { %1652 = dma.done.wait [#allocation3], 512  }
  0x12   :  { %1653 = vsyncadd [#allocation3], 4294966784 }
  0x13   :  { %1654 = dma.done.wait [#allocation6], 576  }
  0x14   :  { %1655 = vsyncadd [#allocation6], 4294966720 }
  0x15   :  { %1656 = dma.done.wait [#allocation9], 8320  }
  0x16   :  { %1657 = vsyncadd [#allocation9], 4294958976  ;;  %v1423_v0 = vld [vmem:[#allocation7 + $0x18] sm:$0xff]  ;;  %v1422_v1 = vld [vmem:[#allocation7 + $0x10] sm:$0xff]  ;;  %vm191_vm0 = vcmask 523264   ;;  %s1667_s2 = smov [#allocation11]  }
  0x17   :  { %208 = vmatpush.bf16.msra.mxu0 %v1423_v0  ;;  %1488 = vmatpush.bf16.msra.mxu3 %v1423_v0  ;;  %v1431_v2 = vld [vmem:[#allocation8 + $0x38] sm:$0xff]  ;;  %v1421_v3 = vld [vmem:[#allocation7 + $0x8] sm:$0xff]  ;;  %v1430_v4 = vld [vmem:[#allocation8 + $0x30] sm:$0xff]  ;;  %s1101_s4 = sshll.u32 %s1667_s2, 4  ;;  %s1103_s19 = sshll.u32 %s1754_s5, 4  ;;  %s1102_s4 = int_to_ptr.vmem [resolvable:$true] %s1101_s4  ;;  %s1104_s19 = int_to_ptr.hbm [resolvable:$true] %s1103_s19 }
  0x18   :  { %286 = vmatpush.bf16.msra.mxu1 %v1431_v2  ;;  %v1429_v5 = vld [vmem:[#allocation8 + $0x28] sm:$0xff]  ;;  %v1420_v6 = vld [vmem:[#allocation7] sm:$0xff]  ;;  %v1427_v10 = vld [vmem:[#allocation8 + $0x18] sm:$0xff] }
  0x19   :  { %v1428_v7 = vld [vmem:[#allocation8 + $0x20] sm:$0xff]  ;;  %v1715_v9 = vld [vmem:[#allocation2 + $0x10] sm:$0xff]  ;;  %v1723_v12 = vld [vmem:[#allocation2 + $0x18] sm:$0xff] }
  0x1a   :  { %v1713_v8 = vld [vmem:[#allocation2] sm:$0xff]  ;;  %v1721_v11 = vld [vmem:[#allocation2 + $0x8] sm:$0xff]  ;;  %v1426_v13 = vld [vmem:[#allocation8 + $0x10] sm:$0xff] }
  0x1b   :  { %209 = vmatpush.bf16.msra.mxu0 %v1422_v1  ;;  %1489 = vmatpush.bf16.msra.mxu3 %v1422_v1  ;;  %v1425_v14 = vld [vmem:[#allocation8 + $0x8] sm:$0xff]  ;;  %v1424_v15 = vld [vmem:[#allocation8] sm:$0xff]  ;;  %v1439_v23 = vld [vmem:[#allocation8 + $0x78] sm:$0xff] }
  0x1c   :  { %287 = vmatpush.bf16.msra.mxu1 %v1430_v4  ;;  %376 = vmatpush.bf16.msra.mxu2 %v1439_v23  ;;  %v1438_v24 = vld [vmem:[#allocation8 + $0x70] sm:$0xff]  ;;  %v1437_v25 = vld [vmem:[#allocation8 + $0x68] sm:$0xff]  ;;  %v1436_v27 = vld [vmem:[#allocation8 + $0x60] sm:$0xff] }
  0x1d   :  { %v1435_v32 = vld [vmem:[#allocation8 + $0x58] sm:$0xff]  ;;  %v1434_v33 = vld [vmem:[#allocation8 + $0x50] sm:$0xff]  ;;  %v1433_v34 = vld [vmem:[#allocation8 + $0x48] sm:$0xff] }
  0x1e   :  { %v1432_v35 = vld [vmem:[#allocation8 + $0x40] sm:$0xff] }
  0x1f   :  { %210 = vmatpush.bf16.msra.mxu0 %v1421_v3  ;;  %1490 = vmatpush.bf16.msra.mxu3 %v1421_v3  ;;  %v1500_v37 = vld [vmem:[#allocation10] ss:$0 sm:$0xff] }
  0x20   :  { %288 = vmatpush.bf16.msra.mxu1 %v1429_v5  ;;  %377 = vmatpush.bf16.msra.mxu2 %v1438_v24 }
  0x23   :  { %211 = vmatpush.bf16.msra.mxu0 %v1420_v6  ;;  %1491 = vmatpush.bf16.msra.mxu3 %v1420_v6 }
  0x24   :  { %289 = vmatpush.bf16.msra.mxu1 %v1428_v7  ;;  %378 = vmatpush.bf16.msra.mxu2 %v1437_v25 }
  0x26   :  { %1147 = vmatmul.msk.bf16.vlgmr.msra.gmra.mxu0 %vm191_vm0, %v1713_v8  ;;  %1149 = vmatmul.msk.bf16.vlgmr.msra.gmra.mxu3 %vm191_vm0, %v1715_v9 }
  0x28   :  { %290 = vmatpush.bf16.msra.mxu1 %v1427_v10  ;;  %379 = vmatpush.bf16.msra.mxu2 %v1436_v27  ;;  %v1501_v10 = vld [vmem:[#allocation10 + $0x1] ss:$0 sm:$0xff] }
  0x2c   :  { %291 = vmatpush.bf16.msra.mxu1 %v1426_v13  ;;  %380 = vmatpush.bf16.msra.mxu2 %v1435_v32 }
  0x30   :  { %292 = vmatpush.bf16.msra.mxu1 %v1425_v14  ;;  %381 = vmatpush.bf16.msra.mxu2 %v1434_v33 }
  0x34   :  { %293 = vmatpush.bf16.msra.mxu1 %v1424_v15  ;;  %382 = vmatpush.bf16.msra.mxu2 %v1433_v34  ;;  %v1447_v34 = vld [vmem:[#allocation8 + $0xb8] sm:$0xff] }
  0x35   :  { %535 = vmatpush.bf16.msrb.mxu0 %v1447_v34 }
  0x36   :  { %1148 = vmatmul.msk.bf16.gmra.mxu0 %vm191_vm0, %v1721_v11  ;;  %1150 = vmatmul.msk.bf16.gmra.mxu3 %vm191_vm0, %v1723_v12 }
  0x38   :  { %383 = vmatpush.bf16.msra.mxu2 %v1432_v35  ;;  %v1446_v35 = vld [vmem:[#allocation8 + $0xb0] sm:$0xff] }
  0x39   :  { %536 = vmatpush.bf16.msrb.mxu0 %v1446_v35 }
  0xa3   :  { %v213_v16 = vpop.f32.mrf.mxu0 }
  0xa9   :  { %v223_v21 = vpop.f32.mrf.mxu3 }
  0xab   :  { %v215_v17 = vpop.f32.mrf.mxu0 }
  0xac   :  { %v233_v18 = vpack.c.bf16 %v215_v17, %v213_v16 }
  0xae   :  { %294 = vmatmul.bf16.vlgmr.msra.gmra.mxu1 %v233_v18 }
  0xb1   :  { %v225_v26 = vpop.f32.mrf.mxu3 }
  0xb2   :  { %v235_v28 = vpack.c.bf16 %v225_v26, %v223_v21 }
  0xb3   :  { %v218_v19 = vpop.f32.mrf.mxu0 }
  0xb9   :  { %v228_v29 = vpop.f32.mrf.mxu3 }
  0xbb   :  { %v220_v20 = vpop.f32.mrf.mxu0 }
  0xbc   :  { %v234_v22 = vpack.c.bf16 %v220_v20, %v218_v19 }
  0xbe   :  { %299 = vmatmul.bf16.gmra.mxu1 %v234_v22 }
  0xc1   :  { %v230_v30 = vpop.f32.mrf.mxu3 }
  0xc2   :  { %v236_v31 = vpack.c.bf16 %v230_v30, %v228_v29 }
  0xce   :  { %304 = vmatmul.bf16.gmra.mxu1 %v235_v28 }
  0xde   :  { %309 = vmatmul.bf16.gmra.mxu1 %v236_v31 }
 0x12b   :  { %v295_v36 = vpop.f32.mrf.mxu1 }
 0x12c   :  { %v296_v38 = vadd.f32 %v1500_v37, %v295_v36  ;;  %v1445_v36 = vld [vmem:[#allocation8 + $0xa8] sm:$0xff] }
 0x12d   :  { %537 = vmatpush.bf16.msrb.mxu0 %v1445_v36 }
 0x12e   :  { %v315_v41 = vmax.f32 %v296_v38, 0.0  ;;  %v1443_v38 = vld [vmem:[#allocation8 + $0x98] sm:$0xff] }
 0x133   :  { %v297_v39 = vpop.f32.mrf.mxu1 }
 0x134   :  { %v298_v40 = vadd.f32 %v1500_v37, %v297_v39  ;;  %v1442_v39 = vld [vmem:[#allocation8 + $0x90] sm:$0xff] }
 0x136   :  { %v316_v42 = vmax.f32 %v298_v40, 0.0  ;;  %v1441_v40 = vld [vmem:[#allocation8 + $0x88] sm:$0xff] }
 0x138   :  { %v323_v43 = vpack.c.bf16 %v316_v42, %v315_v41  ;;  %v1440_v41 = vld [vmem:[#allocation8 + $0x80] sm:$0xff] }
 0x13a   :  { %384 = vmatmul.bf16.vlgmr.msra.gmra.mxu2 %v323_v43 }
 0x13b   :  { %v300_v44 = vpop.f32.mrf.mxu1 }
 0x13c   :  { %v301_v45 = vadd.f32 %v1500_v37, %v300_v44 }
 0x13e   :  { %v317_v48 = vmax.f32 %v301_v45, 0.0 }
 0x143   :  { %v302_v46 = vpop.f32.mrf.mxu1 }
 0x144   :  { %v303_v47 = vadd.f32 %v1500_v37, %v302_v46 }
 0x146   :  { %v318_v49 = vmax.f32 %v303_v47, 0.0 }
 0x148   :  { %v324_v50 = vpack.c.bf16 %v318_v49, %v317_v48  ;;  %v1455_v48 = vld [vmem:[#allocation8 + $0xf8] sm:$0xff]  ;;  %v1454_v49 = vld [vmem:[#allocation8 + $0xf0] sm:$0xff] }
 0x14a   :  { %389 = vmatmul.bf16.gmra.mxu2 %v324_v50 }
 0x14b   :  { %v305_v51 = vpop.f32.mrf.mxu1 }
 0x14c   :  { %v306_v52 = vadd.f32 %v1500_v37, %v305_v51  ;;  %v1453_v51 = vld [vmem:[#allocation8 + $0xe8] sm:$0xff] }
 0x14e   :  { %v319_v55 = vmax.f32 %v306_v52, 0.0  ;;  %v1452_v52 = vld [vmem:[#allocation8 + $0xe0] sm:$0xff] }
 0x153   :  { %v307_v53 = vpop.f32.mrf.mxu1 }
 0x154   :  { %v308_v54 = vadd.f32 %v1500_v37, %v307_v53 }
 0x156   :  { %v320_v56 = vmax.f32 %v308_v54, 0.0 }
 0x158   :  { %v325_v57 = vpack.c.bf16 %v320_v56, %v319_v55 }
 0x15a   :  { %394 = vmatmul.bf16.gmra.mxu2 %v325_v57 }
 0x15b   :  { %v310_v58 = vpop.f32.mrf.mxu1 }
 0x15c   :  { %v311_v59 = vadd.f32 %v1500_v37, %v310_v58  ;;  %v1451_v58 = vld [vmem:[#allocation8 + $0xd8] sm:$0xff] }
 0x15e   :  { %v321_v62 = vmax.f32 %v311_v59, 0.0  ;;  %v1450_v59 = vld [vmem:[#allocation8 + $0xd0] sm:$0xff] }
 0x163   :  { %v312_v60 = vpop.f32.mrf.mxu1 }
 0x164   :  { %v313_v61 = vadd.f32 %v1500_v37, %v312_v60  ;;  %v1444_v37 = vld [vmem:[#allocation8 + $0xa0] sm:$0xff]  ;;  %v1449_v60 = vld [vmem:[#allocation8 + $0xc8] sm:$0xff] }
 0x165   :  { %538 = vmatpush.bf16.msrb.mxu0 %v1444_v37 }
 0x166   :  { %v322_v63 = vmax.f32 %v313_v61, 0.0  ;;  %v1448_v61 = vld [vmem:[#allocation8 + $0xc0] sm:$0xff] }
 0x168   :  { %v326_v0 = vpack.c.bf16 %v322_v63, %v321_v62  ;;  %v1502_v63 = vld [vmem:[#allocation10 + $0x2] ss:$0 sm:$0xff] }
 0x169   :  { %539 = vmatpush.bf16.msrb.mxu0 %v1443_v38  ;;  %v1503_v38 = vld [vmem:[#allocation10 + $0x3] ss:$0 sm:$0xff] }
 0x16a   :  { %399 = vmatmul.bf16.gmra.mxu2 %v326_v0 }
 0x16d   :  { %540 = vmatpush.bf16.msrb.mxu0 %v1442_v39 }
 0x171   :  { %541 = vmatpush.bf16.msrb.mxu0 %v1441_v40 }
 0x175   :  { %542 = vmatpush.bf16.msrb.mxu0 %v1440_v41 }
 0x1bd   :  { %v385_v1 = vpop.f32.mrf.mxu2 }
 0x1be   :  { %v386_v28 = vadd.f32 %v1501_v10, %v385_v1 }
 0x1c0   :  { %v405_v32 = vmax.f32 %v386_v28, 0.0 }
 0x1c5   :  { %v387_v2 = vpop.f32.mrf.mxu2 }
 0x1c6   :  { %v388_v25 = vadd.f32 %v1501_v10, %v387_v2 }
 0x1c8   :  { %v406_v30 = vmax.f32 %v388_v25, 0.0 }
 0x1ca   :  { %v413_v33 = vpack.c.bf16 %v406_v30, %v405_v32 }
 0x1cd   :  { %v390_v3 = vpop.f32.mrf.mxu2 }
 0x1ce   :  { %v391_v23 = vadd.f32 %v1501_v10, %v390_v3 }
 0x1d0   :  { %v407_v29 = vmax.f32 %v391_v23, 0.0 }
 0x1d5   :  { %v392_v4 = vpop.f32.mrf.mxu2 }
 0x1d6   :  { %v393_v20 = vadd.f32 %v1501_v10, %v392_v4 }
 0x1d8   :  { %v408_v26 = vmax.f32 %v393_v20, 0.0 }
 0x1da   :  { %v414_v31 = vpack.c.bf16 %v408_v26, %v407_v29 }
 0x1dd   :  { %v395_v5 = vpop.f32.mrf.mxu2 }
 0x1de   :  { %v396_v17 = vadd.f32 %v1501_v10, %v395_v5 }
 0x1e0   :  { %v409_v24 = vmax.f32 %v396_v17, 0.0 }
 0x1e5   :  { %v397_v6 = vpop.f32.mrf.mxu2 }
 0x1e6   :  { %v398_v15 = vadd.f32 %v1501_v10, %v397_v6 }
 0x1e8   :  { %v410_v21 = vmax.f32 %v398_v15, 0.0 }
 0x1ea   :  { %v415_v27 = vpack.c.bf16 %v410_v21, %v409_v24 }
 0x1ed   :  { %v400_v7 = vpop.f32.mrf.mxu2 }
 0x1ee   :  { %v401_v13 = vadd.f32 %v1501_v10, %v400_v7 }
 0x1f0   :  { %v411_v18 = vmax.f32 %v401_v13, 0.0 }
 0x1f5   :  { %v402_v14 = vpop.f32.mrf.mxu2 }
 0x1f6   :  { %v403_v16 = vadd.f32 %v1501_v10, %v402_v14 }
 0x1f8   :  { %v412_v19 = vmax.f32 %v403_v16, 0.0 }
 0x1fa   :  { %v416_v22 = vpack.c.bf16 %v412_v19, %v411_v18 }
 0x1fc   :  { %457 = vmatpush.bf16.msrb.mxu3 %v416_v22 }
 0x200   :  { %458 = vmatpush.bf16.msrb.mxu3 %v415_v27 }
 0x204   :  { %459 = vmatpush.bf16.msrb.mxu3 %v414_v31 }
 0x208   :  { %460 = vmatpush.bf16.msrb.mxu3 %v413_v33 }
 0x20b   :  { %1215 = vmatmul.msk.bf16.vlgmr.msrb.gmra.mxu3 %vm191_vm0, %v1713_v8 }
 0x20c   :  { %625 = vmatpush.bf16.msra.mxu3 %v1455_v48 }
 0x210   :  { %626 = vmatpush.bf16.msra.mxu3 %v1454_v49 }
 0x214   :  { %627 = vmatpush.bf16.msra.mxu3 %v1453_v51 }
 0x218   :  { %628 = vmatpush.bf16.msra.mxu3 %v1452_v52 }
 0x21b   :  { %1216 = vmatmul.msk.bf16.gmra.mxu3 %vm191_vm0, %v1721_v11 }
 0x21c   :  { %629 = vmatpush.bf16.msra.mxu3 %v1451_v58 }
 0x220   :  { %630 = vmatpush.bf16.msra.mxu3 %v1450_v59 }
 0x224   :  { %631 = vmatpush.bf16.msra.mxu3 %v1449_v60  ;;  %v1463_v60 = vld [vmem:[#allocation8 + $0x138] sm:$0xff] }
 0x225   :  { %784 = vmatpush.bf16.msrb.mxu2 %v1463_v60 }
 0x228   :  { %632 = vmatpush.bf16.msra.mxu3 %v1448_v61  ;;  %v1462_v61 = vld [vmem:[#allocation8 + $0x130] sm:$0xff] }
 0x229   :  { %785 = vmatpush.bf16.msrb.mxu2 %v1462_v61  ;;  %v1478_v61 = vld [vmem:[#allocation8 + $0x1b0] sm:$0xff] }
 0x22b   :  { %1217 = vmatmul.msk.bf16.gmra.mxu3 %vm191_vm0, %v1715_v9 }
 0x23b   :  { %1218 = vmatmul.msk.bf16.gmra.mxu3 %vm191_vm0, %v1723_v12 }
 0x28e   :  { %v462_v42 = vpop.f32.mrf.mxu3 }
 0x296   :  { %v464_v43 = vpop.f32.mrf.mxu3 }
 0x297   :  { %v482_v44 = vpack.c.bf16 %v464_v43, %v462_v42 }
 0x299   :  { %543 = vmatmul.bf16.vlgmr.msrb.gmra.mxu0 %v482_v44 }
 0x29e   :  { %v467_v45 = vpop.f32.mrf.mxu3 }
 0x2a6   :  { %v469_v46 = vpop.f32.mrf.mxu3 }
 0x2a7   :  { %v483_v47 = vpack.c.bf16 %v469_v46, %v467_v45 }
 0x2a9   :  { %548 = vmatmul.bf16.gmra.mxu0 %v483_v47 }
 0x2ae   :  { %v472_v50 = vpop.f32.mrf.mxu3 }
 0x2b6   :  { %v474_v53 = vpop.f32.mrf.mxu3 }
 0x2b7   :  { %v484_v54 = vpack.c.bf16 %v474_v53, %v472_v50 }
 0x2b9   :  { %553 = vmatmul.bf16.gmra.mxu0 %v484_v54 }
 0x2be   :  { %v477_v55 = vpop.f32.mrf.mxu3 }
 0x2c6   :  { %v479_v56 = vpop.f32.mrf.mxu3 }
 0x2c7   :  { %v485_v57 = vpack.c.bf16 %v479_v56, %v477_v55 }
 0x2c9   :  { %558 = vmatmul.bf16.gmra.mxu0 %v485_v57 }
 0x316   :  { %v544_v62 = vpop.f32.mrf.mxu0 }
 0x317   :  { %v545_v0 = vadd.f32 %v1502_v63, %v544_v62  ;;  %v1461_v62 = vld [vmem:[#allocation8 + $0x128] sm:$0xff] }
 0x318   :  { %786 = vmatpush.bf16.msrb.mxu2 %v1461_v62  ;;  %v1477_v62 = vld [vmem:[#allocation8 + $0x1a8] sm:$0xff] }
 0x319   :  { %v564_v3 = vmax.f32 %v545_v0, 0.0  ;;  %v1459_v0 = vld [vmem:[#allocation8 + $0x118] sm:$0xff] }
 0x31e   :  { %v546_v1 = vpop.f32.mrf.mxu0 }
 0x31f   :  { %v547_v2 = vadd.f32 %v1502_v63, %v546_v1  ;;  %v1457_v1 = vld [vmem:[#allocation8 + $0x108] sm:$0xff] }
 0x321   :  { %v565_v4 = vmax.f32 %v547_v2, 0.0 }
 0x323   :  { %v572_v5 = vpack.c.bf16 %v565_v4, %v564_v3 }
 0x325   :  { %633 = vmatmul.bf16.vlgmr.msra.gmra.mxu3 %v572_v5 }
 0x326   :  { %v549_v6 = vpop.f32.mrf.mxu0 }
 0x327   :  { %v550_v7 = vadd.f32 %v1502_v63, %v549_v6 }
 0x329   :  { %v566_v14 = vmax.f32 %v550_v7, 0.0 }
 0x32e   :  { %v551_v10 = vpop.f32.mrf.mxu0 }
 0x32f   :  { %v552_v13 = vadd.f32 %v1502_v63, %v551_v10  ;;  %v1471_v10 = vld [vmem:[#allocation8 + $0x178] sm:$0xff] }
 0x330   :  { %874 = vmatpush.bf16.msra.mxu0 %v1471_v10 }
 0x331   :  { %v567_v15 = vmax.f32 %v552_v13, 0.0 }
 0x333   :  { %v573_v16 = vpack.c.bf16 %v567_v15, %v566_v14  ;;  %v1468_v14 = vld [vmem:[#allocation8 + $0x160] sm:$0xff] }
 0x335   :  { %638 = vmatmul.bf16.gmra.mxu3 %v573_v16 }
 0x336   :  { %v554_v17 = vpop.f32.mrf.mxu0 }
 0x337   :  { %v555_v18 = vadd.f32 %v1502_v63, %v554_v17 }
 0x339   :  { %v568_v21 = vmax.f32 %v555_v18, 0.0 }
 0x33e   :  { %v556_v19 = vpop.f32.mrf.mxu0 }
 0x33f   :  { %v557_v20 = vadd.f32 %v1502_v63, %v556_v19 }
 0x341   :  { %v569_v22 = vmax.f32 %v557_v20, 0.0  ;;  %v1467_v20 = vld [vmem:[#allocation8 + $0x158] sm:$0xff] }
 0x343   :  { %v574_v23 = vpack.c.bf16 %v569_v22, %v568_v21  ;;  %v1466_v21 = vld [vmem:[#allocation8 + $0x150] sm:$0xff]  ;;  %v1465_v22 = vld [vmem:[#allocation8 + $0x148] sm:$0xff] }
 0x345   :  { %643 = vmatmul.bf16.gmra.mxu3 %v574_v23  ;;  %v1464_v23 = vld [vmem:[#allocation8 + $0x140] sm:$0xff] }
 0x346   :  { %v559_v24 = vpop.f32.mrf.mxu0 }
 0x347   :  { %v560_v25 = vadd.f32 %v1502_v63, %v559_v24 }
 0x349   :  { %v570_v28 = vmax.f32 %v560_v25, 0.0  ;;  %v1504_v25 = vld [vmem:[#allocation10 + $0x4] ss:$0 sm:$0xff] }
 0x34e   :  { %v561_v26 = vpop.f32.mrf.mxu0 }
 0x34f   :  { %v562_v27 = vadd.f32 %v1502_v63, %v561_v26  ;;  %v1460_v63 = vld [vmem:[#allocation8 + $0x120] sm:$0xff] }
 0x350   :  { %787 = vmatpush.bf16.msrb.mxu2 %v1460_v63  ;;  %v1505_v63 = vld [vmem:[#allocation10 + $0x5] ss:$0 sm:$0xff] }
 0x351   :  { %v571_v29 = vmax.f32 %v562_v27, 0.0 }
 0x353   :  { %v575_v30 = vpack.c.bf16 %v571_v29, %v570_v28 }
 0x354   :  { %788 = vmatpush.bf16.msrb.mxu2 %v1459_v0 }
 0x355   :  { %648 = vmatmul.bf16.gmra.mxu3 %v575_v30 }
 0x3a8   :  { %v634_v31 = vpop.f32.mrf.mxu3 }
 0x3a9   :  { %v635_v54 = vadd.f32 %v1503_v38, %v634_v31 }
 0x3ab   :  { %v654_v58 = vmax.f32 %v635_v54, 0.0 }
 0x3b0   :  { %v636_v32 = vpop.f32.mrf.mxu3 }
 0x3b1   :  { %v637_v51 = vadd.f32 %v1503_v38, %v636_v32 }
 0x3b3   :  { %v655_v56 = vmax.f32 %v637_v51, 0.0 }
 0x3b5   :  { %v662_v59 = vpack.c.bf16 %v655_v56, %v654_v58 }
 0x3b8   :  { %v639_v33 = vpop.f32.mrf.mxu3 }
 0x3b9   :  { %v640_v49 = vadd.f32 %v1503_v38, %v639_v33 }
 0x3bb   :  { %v656_v55 = vmax.f32 %v640_v49, 0.0 }
 0x3c0   :  { %v641_v34 = vpop.f32.mrf.mxu3 }
 0x3c1   :  { %v642_v46 = vadd.f32 %v1503_v38, %v641_v34 }
 0x3c3   :  { %v657_v52 = vmax.f32 %v642_v46, 0.0 }
 0x3c5   :  { %v663_v57 = vpack.c.bf16 %v657_v52, %v656_v55 }
 0x3c8   :  { %v644_v35 = vpop.f32.mrf.mxu3 }
 0x3c9   :  { %v645_v43 = vadd.f32 %v1503_v38, %v644_v35 }
 0x3cb   :  { %v658_v50 = vmax.f32 %v645_v43, 0.0 }
 0x3d0   :  { %v646_v36 = vpop.f32.mrf.mxu3 }
 0x3d1   :  { %v647_v41 = vadd.f32 %v1503_v38, %v646_v36 }
 0x3d3   :  { %v659_v47 = vmax.f32 %v647_v41, 0.0 }
 0x3d5   :  { %v664_v53 = vpack.c.bf16 %v659_v47, %v658_v50 }
 0x3d8   :  { %v649_v37 = vpop.f32.mrf.mxu3 }
 0x3d9   :  { %v650_v39 = vadd.f32 %v1503_v38, %v649_v37 }
 0x3db   :  { %v660_v44 = vmax.f32 %v650_v39, 0.0 }
 0x3e0   :  { %v651_v40 = vpop.f32.mrf.mxu3 }
 0x3e1   :  { %v652_v42 = vadd.f32 %v1503_v38, %v651_v40 }
 0x3e3   :  { %v661_v45 = vmax.f32 %v652_v42, 0.0 }
 0x3e5   :  { %v665_v48 = vpack.c.bf16 %v661_v45, %v660_v44 }
 0x3e7   :  { %706 = vmatpush.bf16.msrb.mxu1 %v665_v48 }
 0x3eb   :  { %707 = vmatpush.bf16.msrb.mxu1 %v664_v53 }
 0x3ef   :  { %708 = vmatpush.bf16.msrb.mxu1 %v663_v57 }
 0x3f3   :  { %709 = vmatpush.bf16.msrb.mxu1 %v662_v59  ;;  %v1479_v59 = vld [vmem:[#allocation8 + $0x1b8] sm:$0xff] }
 0x3f6   :  { %1283 = vmatmul.msk.bf16.vlgmr.msrb.gmra.mxu1 %vm191_vm0, %v1713_v8  ;;  %v1458_v8 = vld [vmem:[#allocation8 + $0x110] sm:$0xff] }
 0x3f7   :  { %789 = vmatpush.bf16.msrb.mxu2 %v1458_v8  ;;  %1018 = vmatpush.bf16.msra.mxu1 %v1479_v59 }
 0x3fb   :  { %790 = vmatpush.bf16.msrb.mxu2 %v1457_v1  ;;  %1019 = vmatpush.bf16.msra.mxu1 %v1478_v61  ;;  %v1476_v1 = vld [vmem:[#allocation8 + $0x1a0] sm:$0xff] }
 0x3ff   :  { %1020 = vmatpush.bf16.msra.mxu1 %v1477_v62 }
 0x403   :  { %1021 = vmatpush.bf16.msra.mxu1 %v1476_v1 }
 0x406   :  { %1284 = vmatmul.msk.bf16.gmra.mxu1 %vm191_vm0, %v1721_v11  ;;  %v1456_v11 = vld [vmem:[#allocation8 + $0x100] sm:$0xff] }
 0x407   :  { %791 = vmatpush.bf16.msrb.mxu2 %v1456_v11 }
 0x416   :  { %1285 = vmatmul.msk.bf16.gmra.mxu1 %vm191_vm0, %v1715_v9  ;;  %v1470_v9 = vld [vmem:[#allocation8 + $0x170] sm:$0xff] }
 0x417   :  { %875 = vmatpush.bf16.msra.mxu0 %v1470_v9 }
 0x426   :  { %1286 = vmatmul.msk.bf16.gmra.mxu1 %vm191_vm0, %v1723_v12  ;;  %v1469_v12 = vld [vmem:[#allocation8 + $0x168] sm:$0xff] }
 0x427   :  { %876 = vmatpush.bf16.msra.mxu0 %v1469_v12 }
 0x42b   :  { %877 = vmatpush.bf16.msra.mxu0 %v1468_v14  ;;  %v1474_v14 = vld [vmem:[#allocation8 + $0x190] sm:$0xff] }
 0x42f   :  { %878 = vmatpush.bf16.msra.mxu0 %v1467_v20  ;;  %v1473_v20 = vld [vmem:[#allocation8 + $0x188] sm:$0xff] }
 0x433   :  { %879 = vmatpush.bf16.msra.mxu0 %v1466_v21 }
 0x437   :  { %880 = vmatpush.bf16.msra.mxu0 %v1465_v22 }
 0x43b   :  { %881 = vmatpush.bf16.msra.mxu0 %v1464_v23 }
 0x473   :  { %v711_v2 = vpop.f32.mrf.mxu1 }
 0x47b   :  { %v713_v3 = vpop.f32.mrf.mxu1 }
 0x47c   :  { %v731_v4 = vpack.c.bf16 %v713_v3, %v711_v2 }
 0x47e   :  { %792 = vmatmul.bf16.vlgmr.msrb.gmra.mxu2 %v731_v4 }
 0x483   :  { %v716_v5 = vpop.f32.mrf.mxu1 }
 0x48b   :  { %v718_v6 = vpop.f32.mrf.mxu1 }
 0x48c   :  { %v732_v7 = vpack.c.bf16 %v718_v6, %v716_v5  ;;  %v1475_v6 = vld [vmem:[#allocation8 + $0x198] sm:$0xff] }
 0x48d   :  { %1022 = vmatpush.bf16.msra.mxu1 %v1475_v6 }
 0x48e   :  { %797 = vmatmul.bf16.gmra.mxu2 %v732_v7 }
 0x491   :  { %1023 = vmatpush.bf16.msra.mxu1 %v1474_v14 }
 0x493   :  { %v721_v13 = vpop.f32.mrf.mxu1 }
 0x495   :  { %1024 = vmatpush.bf16.msra.mxu1 %v1473_v20 }
 0x49b   :  { %v723_v15 = vpop.f32.mrf.mxu1 }
 0x49c   :  { %v733_v16 = vpack.c.bf16 %v723_v15, %v721_v13 }
 0x49e   :  { %802 = vmatmul.bf16.gmra.mxu2 %v733_v16 }
 0x4a3   :  { %v726_v17 = vpop.f32.mrf.mxu1 }
 0x4ab   :  { %v728_v18 = vpop.f32.mrf.mxu1 }
 0x4ac   :  { %v734_v19 = vpack.c.bf16 %v728_v18, %v726_v17 }
 0x4ae   :  { %807 = vmatmul.bf16.gmra.mxu2 %v734_v19 }
 0x501   :  { %v793_v24 = vpop.f32.mrf.mxu2 }
 0x502   :  { %v794_v26 = vadd.f32 %v1504_v25, %v793_v24 }
 0x504   :  { %v813_v29 = vmax.f32 %v794_v26, 0.0  ;;  %v1472_v26 = vld [vmem:[#allocation8 + $0x180] sm:$0xff] }
 0x505   :  { %1025 = vmatpush.bf16.msra.mxu1 %v1472_v26 }
 0x509   :  { %v795_v27 = vpop.f32.mrf.mxu2 }
 0x50a   :  { %v796_v28 = vadd.f32 %v1504_v25, %v795_v27  ;;  %v1487_v27 = vld [vmem:[#allocation8 + $0x1f8] sm:$0xff] }
 0x50b   :  { %1082 = vmatpush.bf16.msra.mxu2 %v1487_v27 }
 0x50c   :  { %v814_v30 = vmax.f32 %v796_v28, 0.0  ;;  %v1486_v28 = vld [vmem:[#allocation8 + $0x1f0] sm:$0xff] }
 0x50e   :  { %v821_v31 = vpack.c.bf16 %v814_v30, %v813_v29  ;;  %v1485_v29 = vld [vmem:[#allocation8 + $0x1e8] sm:$0xff]  ;;  %v1484_v30 = vld [vmem:[#allocation8 + $0x1e0] sm:$0xff] }
 0x50f   :  { %1083 = vmatpush.bf16.msra.mxu2 %v1486_v28 }
 0x510   :  { %882 = vmatmul.bf16.vlgmr.msra.gmra.mxu0 %v821_v31  ;;  %v1483_v31 = vld [vmem:[#allocation8 + $0x1d8] sm:$0xff] }
 0x511   :  { %v798_v32 = vpop.f32.mrf.mxu2 }
 0x512   :  { %v799_v33 = vadd.f32 %v1504_v25, %v798_v32  ;;  %v1482_v32 = vld [vmem:[#allocation8 + $0x1d0] sm:$0xff] }
 0x513   :  { %1084 = vmatpush.bf16.msra.mxu2 %v1485_v29 }
 0x514   :  { %v815_v36 = vmax.f32 %v799_v33, 0.0  ;;  %v1481_v33 = vld [vmem:[#allocation8 + $0x1c8] sm:$0xff] }
 0x517   :  { %1085 = vmatpush.bf16.msra.mxu2 %v1484_v30 }
 0x519   :  { %v800_v34 = vpop.f32.mrf.mxu2 }
 0x51a   :  { %v801_v35 = vadd.f32 %v1504_v25, %v800_v34 }
 0x51b   :  { %1086 = vmatpush.bf16.msra.mxu2 %v1483_v31 }
 0x51c   :  { %v816_v37 = vmax.f32 %v801_v35, 0.0 }
 0x51e   :  { %v822_v38 = vpack.c.bf16 %v816_v37, %v815_v36  ;;  %v1480_v37 = vld [vmem:[#allocation8 + $0x1c0] sm:$0xff] }
 0x51f   :  { %1087 = vmatpush.bf16.msra.mxu2 %v1482_v32 }
 0x520   :  { %887 = vmatmul.bf16.gmra.mxu0 %v822_v38  ;;  %v1506_v38 = vld [vmem:[#allocation10 + $0x6] ss:$0 sm:$0xff] }
 0x521   :  { %v803_v39 = vpop.f32.mrf.mxu2 }
 0x522   :  { %v804_v40 = vadd.f32 %v1504_v25, %v803_v39 }
 0x523   :  { %1088 = vmatpush.bf16.msra.mxu2 %v1481_v33 }
 0x524   :  { %v817_v43 = vmax.f32 %v804_v40, 0.0 }
 0x527   :  { %1089 = vmatpush.bf16.msra.mxu2 %v1480_v37 }
 0x529   :  { %v805_v41 = vpop.f32.mrf.mxu2 }
 0x52a   :  { %v806_v42 = vadd.f32 %v1504_v25, %v805_v41 }
 0x52c   :  { %v818_v44 = vmax.f32 %v806_v42, 0.0 }
 0x52e   :  { %v823_v45 = vpack.c.bf16 %v818_v44, %v817_v43  ;;  %v1507_v44 = vld [vmem:[#allocation10 + $0x7] ss:$0 sm:$0xff] }
 0x530   :  { %892 = vmatmul.bf16.gmra.mxu0 %v823_v45 }
 0x531   :  { %v808_v46 = vpop.f32.mrf.mxu2 }
 0x532   :  { %v809_v47 = vadd.f32 %v1504_v25, %v808_v46 }
 0x534   :  { %v819_v50 = vmax.f32 %v809_v47, 0.0 }
 0x539   :  { %v810_v48 = vpop.f32.mrf.mxu2 }
 0x53a   :  { %v811_v49 = vadd.f32 %v1504_v25, %v810_v48  ;;  %v915_v25 = vld [vmem:[#allocation5] sm:$0xf] }
 0x53c   :  { %v820_v51 = vmax.f32 %v811_v49, 0.0 }
 0x53e   :  { %v824_v52 = vpack.c.bf16 %v820_v51, %v819_v50 }
 0x540   :  { %897 = vmatmul.bf16.gmra.mxu0 %v824_v52 }
 0x58d   :  { %v883_v53 = vpop.f32.mrf.mxu0 }
 0x58e   :  { %v884_v18 = vadd.f32 %v1505_v63, %v883_v53 }
 0x590   :  { %v903_v23 = vmax.f32 %v884_v18, 0.0 }
 0x595   :  { %v885_v54 = vpop.f32.mrf.mxu0 }
 0x596   :  { %v886_v15 = vadd.f32 %v1505_v63, %v885_v54 }
 0x598   :  { %v904_v21 = vmax.f32 %v886_v15, 0.0 }
 0x59a   :  { %v911_v24 = vpack.c.bf16 %v904_v21, %v903_v23 }
 0x59d   :  { %v888_v55 = vpop.f32.mrf.mxu0 }
 0x59e   :  { %v889_v13 = vadd.f32 %v1505_v63, %v888_v55 }
 0x5a0   :  { %v905_v19 = vmax.f32 %v889_v13, 0.0 }
 0x5a5   :  { %v890_v56 = vpop.f32.mrf.mxu0 }
 0x5a6   :  { %v891_v7 = vadd.f32 %v1505_v63, %v890_v56 }
 0x5a8   :  { %v906_v16 = vmax.f32 %v891_v7, 0.0 }
 0x5aa   :  { %v912_v22 = vpack.c.bf16 %v906_v16, %v905_v19 }
 0x5ad   :  { %v893_v57 = vpop.f32.mrf.mxu0 }
 0x5ae   :  { %v894_v3 = vadd.f32 %v1505_v63, %v893_v57 }
 0x5b0   :  { %v907_v12 = vmax.f32 %v894_v3, 0.0 }
 0x5b5   :  { %v895_v58 = vpop.f32.mrf.mxu0 }
 0x5b6   :  { %v896_v11 = vadd.f32 %v1505_v63, %v895_v58 }
 0x5b8   :  { %v908_v10 = vmax.f32 %v896_v11, 0.0 }
 0x5ba   :  { %v913_v17 = vpack.c.bf16 %v908_v10, %v907_v12 }
 0x5bd   :  { %v898_v60 = vpop.f32.mrf.mxu0 }
 0x5be   :  { %v899_v0 = vadd.f32 %v1505_v63, %v898_v60 }
 0x5c0   :  { %v909_v4 = vmax.f32 %v899_v0, 0.0 }
 0x5c5   :  { %v900_v8 = vpop.f32.mrf.mxu0 }
 0x5c6   :  { %v901_v2 = vadd.f32 %v1505_v63, %v900_v8 }
 0x5c8   :  { %v910_v5 = vmax.f32 %v901_v2, 0.0 }
 0x5ca   :  { %v914_v9 = vpack.c.bf16 %v910_v5, %v909_v4 }
 0x5cc   :  { %923 = vmatpush.bf16.msrb.mxu3 %v914_v9 }
 0x5d0   :  { %924 = vmatpush.bf16.msrb.mxu3 %v913_v17 }
 0x5d4   :  { %925 = vmatpush.bf16.msrb.mxu3 %v912_v22 }
 0x5d8   :  { %926 = vmatpush.bf16.msrb.mxu3 %v911_v24 }
 0x5db   :  { %1351 = vmatmul.msk.bf16.vlgmr.msrb.gmra.mxu3 %vm191_vm0, %v915_v25 }
 0x65e   :  { %v928_v34 = vpop.f32.mrf.mxu3 }
 0x65f   :  { %v968_v35 = vpack.c.bf16 %v928_v34, %v928_v34 }
 0x661   :  { %1026 = vmatmul.bf16.vlgmr.msra.gmra.mxu1 %v968_v35 }
 0x666   :  { %v930_v36 = vpop.f32.mrf.mxu3 }
 0x6de   :  { %v1027_v39 = vpop.f32.mrf.mxu1 }
 0x6df   :  { %v1028_v40 = vadd.f32 %v1506_v38, %v1027_v39 }
 0x6e1   :  { %v1031_v41 = vmax.f32 %v1028_v40, 0.0 }
 0x6e3   :  { %v1032_v42 = vpack.c.bf16 %v1031_v41, %v1031_v41 }
 0x6e5   :  { %1090 = vmatmul.bf16.vlgmr.msra.gmra.mxu2 %v1032_v42 }
 0x6e6   :  { %v1029_v43 = vpop.f32.mrf.mxu1 }
 0x768   :  { %v1091_v45 = vpop.f32.mrf.mxu2 }
 0x769   :  { %v1092_v46 = vadd.f32 %v1507_v44, %v1091_v45 }
 0x76b   :  { %1095 = vst [vmem:[#allocation11] sm:$0xff] %v1092_v46 }
 0x76c   :  { %1106 = dma.vmem_to_hbm [thread:$0]  %s1102_s4, 128, %s1104_s19, [#allocation4]  }
 0x770   :  { %v1093_v47 = vpop.f32.mrf.mxu2 }
 0x771   :  { %1658 = dma.done.wait [#allocation4], 128  }
 0x772   :  { %1659 = vsyncadd [#allocation4], 4294967168 }
 0x773   :  { %1111 = vsyncpa [#allocation3], 1 }
 0x774   :  { %1112 = vsyncpa [#allocation6], 1 }
 0x775   :  { %1113 = vsyncpa [#allocation9], 1 }
 0x776   :  { %1114 = vsyncpa [#allocation4], 1 }

</bundles_post_ra>
